<compile_context>
chip_gen: v5e
topology: v5e:2x2
jax: 0.10.0
libtpu: 0.0.40
codegen_flags: <defaults>
</compile_context>

<pallas_src>
import jax
import jax.numpy as jnp
import numpy as np
from jax.experimental import pallas as pl
from jax.experimental.pallas import tpu as pltpu


# ----------------------------------------------------------------------------
# Kernel
# ----------------------------------------------------------------------------
def _holo_layer_kernel(
    x_ref,      # (1, TILE_S, D) f32 input block
    tri_ref,    # (TILE_S, TILE_S) f32 lower-triangular causal mask (constant)
    wqkv_ref,   # (D, 3D)  compute dtype
    wout_ref,   # (D, D)
    w1_ref,     # (D, FF)
    w2_ref,     # (FF, D)
    fdft_ref,   # (D, 2R)  fused per-head half-spectrum DFT [real | imag]
    gidft_ref,  # (2R, D)  fused per-head inverse (weights & 1/n baked in)
    o_ref,      # (1, TILE_S, D) f32 output block
    carry_ref,  # (1, 2R) f32 scratch: running causal sum of bound spectrum
):
    seq_tile = pl.program_id(1)

    @pl.when(seq_tile == 0)
    def _():
        carry_ref[...] = jnp.zeros_like(carry_ref)

    x = x_ref[0]                       # (TS, D) f32
    ts, d = x.shape
    r = fdft_ref.shape[1] // 2         # half-spectrum width R = H * (Dh//2 + 1)
    cdt = wqkv_ref.dtype               # MXU operand dtype (bf16 or f32)

    def l2_normalize(t):
        ss = jnp.sum(t * t, axis=-1, keepdims=True)
        # F.normalize: t / max(||t||, eps) == t * rsqrt(max(ss, eps^2))
        return t * jax.lax.rsqrt(jnp.maximum(ss, jnp.float32(1e-24)))

    fdft = fdft_ref[...]
    gidft = gidft_ref[...]

    def dft(t):
        # (TS, D) f32 -> half-spectrum real/imag parts, each (TS, R), f32
        p = jnp.dot(t.astype(cdt), fdft, preferred_element_type=jnp.float32)
        return p[:, :r], p[:, r:]

    # ---------------- HRR self-attention ----------------
    xn = l2_normalize(x)
    qkv = jnp.dot(xn.astype(cdt), wqkv_ref[...],
                  preferred_element_type=jnp.float32)          # (TS, 3D) f32
    q = qkv[:, :d]
    k = qkv[:, d:2 * d]
    v = qkv[:, 2 * d:]

    # binding: per-head circular convolution in the half-spectrum domain
    kr, ki = dft(k)
    vr, vi = dft(v)
    b_cat = jnp.concatenate([kr * vr - ki * vi,                # real
                             kr * vi + ki * vr], axis=-1)      # imag  (TS, 2R) f32

    # causal prefix sum over the sequence done in the frequency domain:
    # in-tile lower-triangular matmul (f32) + carried running sum (f32).
    s_cat = jnp.dot(tri_ref[...], b_cat,
                    preferred_element_type=jnp.float32) + carry_ref[...]
    carry_ref[...] = s_cat[ts - 1:ts, :]                       # last row == new carry
    sr = s_cat[:, :r]
    si = s_cat[:, r:]

    # unbinding: per-head circular correlation  conj(Q) * S, then inverse DFT.
    qr, qi = dft(q)                                            # computed late: short live range
    u_cat = jnp.concatenate([qr * sr + qi * si,
                             qr * si - qi * sr], axis=-1)      # (TS, 2R) f32
    values_hat = jnp.dot(u_cat.astype(cdt), gidft,
                         preferred_element_type=jnp.float32)   # (TS, D) f32

    attn_out = jnp.dot(values_hat.astype(cdt), wout_ref[...],
                       preferred_element_type=jnp.float32)
    x1 = x + attn_out

    # ---------------- MLP ----------------
    xn2 = l2_normalize(x1)
    h = jnp.dot(xn2.astype(cdt), w1_ref[...],
                preferred_element_type=jnp.float32)            # (TS, FF) f32
    c = jnp.float32(0.7978845608028654)                        # sqrt(2/pi)
    h = 0.5 * h * (1.0 + jnp.tanh(c * (h + 0.044715 * (h * h * h))))  # tanh GELU (f32, v5e-safe)
    mlp_out = jnp.dot(h.astype(cdt), w2_ref[...],              # cast right after GELU
                      preferred_element_type=jnp.float32)

    o_ref[0] = (x1 + mlp_out).astype(o_ref.dtype)


# ----------------------------------------------------------------------------
# Host-side helpers
# ----------------------------------------------------------------------------
def _halfspec_dft_matrices(num_heads: int, head_dims: int, dtype):
    """Fused block-diagonal per-head half-spectrum DFT / inverse matrices.

    Forward:  F of shape (D, 2R) with columns [real | imag] of the rfft.
    Inverse:  G of shape (2R, D); Hermitian weights (1 or 2) and 1/n baked in,
              so real(ifft(C_full)) == [Cr | Ci] @ G for Hermitian C.
    """
    n = head_dims
    r = n // 2 + 1
    jt = np.arange(n, dtype=np.float64)[:, None]
    kf = np.arange(r, dtype=np.float64)[None, :]
    ang_f = 2.0 * np.pi * jt * kf / n
    fr = np.cos(ang_f)                        # (n, r)
    fi = -np.sin(ang_f)

    w = np.full((r,), 2.0)
    w[0] = 1.0
    if n % 2 == 0:
        w[-1] = 1.0
    kf2 = np.arange(r, dtype=np.float64)[:, None]
    mt = np.arange(n, dtype=np.float64)[None, :]
    ang_g = 2.0 * np.pi * kf2 * mt / n
    gr = (w[:, None] * np.cos(ang_g)) / n     # (r, n)
    gi = (-w[:, None] * np.sin(ang_g)) / n    # (r, n)

    d = num_heads * n
    R = num_heads * r
    F = np.zeros((d, 2 * R), dtype=np.float64)
    G = np.zeros((2 * R, d), dtype=np.float64)
    for h in range(num_heads):
        F[h * n:(h + 1) * n, h * r:(h + 1) * r] = fr
        F[h * n:(h + 1) * n, R + h * r:R + (h + 1) * r] = fi
        G[h * r:(h + 1) * r, h * n:(h + 1) * n] = gr
        G[R + h * r:R + (h + 1) * r, h * n:(h + 1) * n] = gi

    F = jnp.asarray(F.astype(np.float32)).astype(dtype)
    G = jnp.asarray(G.astype(np.float32)).astype(dtype)
    return F, G, R


def _vmem_capacity_bytes() -> int:
    try:
        info = pltpu.get_tpu_info()
        cap = getattr(info, "vmem_capacity_bytes", None)
        if cap:
            return int(cap)
    except Exception:
        pass
    return 64 * 1024 * 1024   # conservative fallback (v7x per-core)


def _pick_tile_s(seq_len: int, d: int, ff: int, rtot: int, budget_bytes: int) -> int:
    """Largest seq tile whose double-buffered IO + tri mask + live temporaries fit."""
    smallest = None
    for t in (1024, 512, 256, 128, 64, 32, 16, 8):
        if t > seq_len or seq_len % t:
            continue
        smallest = t
        io = 2 * 2 * t * d * 4                       # double-buffered f32 x/o tiles
        tri = 2 * t * t * 4                          # double-buffered f32 causal mask
        live = t * (10 * d + 8 * rtot + 3 * ff) * 4  # rough in-flight f32 temporaries
        if io + tri + live <= budget_bytes:
            return t
    return smallest if smallest is not None else seq_len


# ----------------------------------------------------------------------------
# Wrapper
# ----------------------------------------------------------------------------
def holo_layer_forward(x, wqkv, wout, w1, w2, *, num_heads: int,
                       compute_dtype=jnp.bfloat16):
    b, s, d = x.shape
    ff = w1.shape[1]
    assert d % num_heads == 0
    head_dims = d // num_heads

    fdft, gidft, rtot = _halfspec_dft_matrices(num_heads, head_dims, compute_dtype)
    wqkv = wqkv.astype(compute_dtype)
    wout = wout.astype(compute_dtype)
    w1 = w1.astype(compute_dtype)
    w2 = w2.astype(compute_dtype)

    cap = _vmem_capacity_bytes()
    budget = int(cap * 0.7)
    cb = jnp.dtype(compute_dtype).itemsize
    const_bytes = 2 * cb * (wqkv.size + wout.size + w1.size + w2.size
                            + fdft.size + gidft.size)
    tile_s = _pick_tile_s(s, d, ff, rtot, max(budget - const_bytes, 0))
    n_s = s // tile_s
    grid = (b, n_s)

    tri = jnp.asarray(np.tril(np.ones((tile_s, tile_s), dtype=np.float32)))

    def const_spec(shape):
        return pl.BlockSpec(shape, lambda bi, si: (0, 0))

    return pl.pallas_call(
        _holo_layer_kernel,
        out_shape=jax.ShapeDtypeStruct((b, s, d), jnp.float32),
        grid=grid,
        in_specs=[
            pl.BlockSpec((1, tile_s, d), lambda bi, si: (bi, si, 0)),  # x
            const_spec((tile_s, tile_s)),   # tri
            const_spec((d, 3 * d)),         # wqkv
            const_spec((d, d)),             # wout
            const_spec((d, ff)),            # w1
            const_spec((ff, d)),            # w2
            const_spec((d, 2 * rtot)),      # fused fwd DFT
            const_spec((2 * rtot, d)),      # fused inverse DFT
        ],
        out_specs=pl.BlockSpec((1, tile_s, d), lambda bi, si: (bi, si, 0)),
        scratch_shapes=[pltpu.VMEM((1, 2 * rtot), jnp.float32)],
        compiler_params=pltpu.CompilerParams(
            dimension_semantics=("parallel", "arbitrary"),
            vmem_limit_bytes=int(cap * 0.85)),
    )(x, tri, wqkv, wout, w1, w2, fdft, gidft)


# ----------------------------------------------------------------------------
# Pure numpy (float64) reference mirroring the PyTorch module
# ----------------------------------------------------------------------------
def _reference_forward(x, wqkv, wout, w1, w2, num_heads):
    x = np.asarray(x, np.float64)
    wqkv = np.asarray(wqkv, np.float64)
    wout = np.asarray(wout, np.float64)
    w1, w2 = np.asarray(w1, np.float64), np.asarray(w2, np.float64)

    def l2n(t):
        n = np.sqrt(np.sum(t * t, axis=-1, keepdims=True))
        return t / np.maximum(n, 1e-12)

    def gelu_tanh(t):
        return 0.5 * t * (1.0 + np.tanh(np.sqrt(2.0 / np.pi) * (t + 0.044715 * t ** 3)))

    bsz, seq, d = x.shape
    h = num_heads
    dh = d // h

    xn = l2n(x)
    q, k, v = np.split(xn @ wqkv, 3, axis=-1)
    q = q.reshape(bsz, seq, h, dh)
    k = k.reshape(bsz, seq, h, dh)
    v = v.reshape(bsz, seq, h, dh)

    kv = np.real(np.fft.ifft(np.fft.fft(k, axis=-1) * np.fft.fft(v, axis=-1), axis=-1))
    s_acc = np.cumsum(kv, axis=1)                              # causal
    vhat = np.real(np.fft.ifft(np.conj(np.fft.fft(q, axis=-1))
                               * np.fft.fft(s_acc, axis=-1), axis=-1))

    attn = vhat.reshape(bsz, seq, d) @ wout
    x1 = x + attn
    hid = gelu_tanh(l2n(x1) @ w1)
    return x1 + hid @ w2


# ----------------------------------------------------------------------------
if __name__ == "__main__":
    B, S, D, H = 2, 8, 32, 8
    FF = 4 * D

    key = jax.random.PRNGKey(0)
    ks = jax.random.split(key, 5)
    x = jax.random.normal(ks[0], (B, S, D), dtype=jnp.float32)
    wqkv = jax.random.normal(ks[1], (D, 3 * D), dtype=jnp.float32) / np.sqrt(D)
    wout = jax.random.normal(ks[2], (D, D), dtype=jnp.float32) / np.sqrt(D)
    w1 = jax.random.normal(ks[3], (D, FF), dtype=jnp.float32) / np.sqrt(D)
    w2 = jax.random.normal(ks[4], (FF, D), dtype=jnp.float32) / np.sqrt(FF)

    ref = _reference_forward(x, wqkv, wout, w1, w2, H)

    # f32 MXU-operand path: tight tolerance vs f64 reference.
    out_f32 = jax.block_until_ready(
        holo_layer_forward(x, wqkv, wout, w1, w2, num_heads=H,
                           compute_dtype=jnp.float32))
    assert out_f32.shape == (B, S, D), out_f32.shape
    np.testing.assert_allclose(np.asarray(out_f32, np.float64), ref,
                               rtol=5e-3, atol=5e-3)

    # bf16 MXU-operand path (default / fast): looser tolerance covers bf16
    # operand rounding; the causal prefix sum and carry remain f32.
    out_bf16 = jax.block_until_ready(
        holo_layer_forward(x, wqkv, wout, w1, w2, num_heads=H,
                           compute_dtype=jnp.bfloat16))
    np.testing.assert_allclose(np.asarray(out_bf16, np.float64), ref,
                               rtol=3e-2, atol=3e-2)

    print("KERNEL_OK")
</pallas_src>

<mosaic_0001>
module attributes {stable_mosaic.version = 11 : i64} {
  func.func @_holo_layer_kernel(%arg0: i32, %arg1: i32, %arg2: memref<1x8x32xf32, #tpu.memory_space<vmem>>, %arg3: memref<8x8xf32, #tpu.memory_space<vmem>>, %arg4: memref<32x96xf32, #tpu.memory_space<vmem>>, %arg5: memref<32x32xf32, #tpu.memory_space<vmem>>, %arg6: memref<32x128xf32, #tpu.memory_space<vmem>>, %arg7: memref<128x32xf32, #tpu.memory_space<vmem>>, %arg8: memref<32x48xf32, #tpu.memory_space<vmem>>, %arg9: memref<48x32xf32, #tpu.memory_space<vmem>>, %arg10: memref<1x8x32xf32, #tpu.memory_space<vmem>>, %arg11: memref<1x48xf32, #tpu.memory_space<vmem>>) attributes {dimension_semantics = [#tpu.dimension_semantics<parallel>, #tpu.dimension_semantics<arbitrary>], iteration_bounds = array<i64: 2, 1>, scalar_prefetch = 0 : i64, scratch_operands = 1 : i64, tpu.core_type = #tpu.core_type<tc>, window_params = [{transform_indices = @transform_0, window_bounds = array<i64: 1, 8, 32>}, {pipeline_mode = #tpu.pipeline_mode<synchronous>, transform_indices = @transform_1, window_bounds = array<i64: 8, 8>}, {pipeline_mode = #tpu.pipeline_mode<synchronous>, transform_indices = @transform_2, window_bounds = array<i64: 32, 96>}, {pipeline_mode = #tpu.pipeline_mode<synchronous>, transform_indices = @transform_3, window_bounds = array<i64: 32, 32>}, {pipeline_mode = #tpu.pipeline_mode<synchronous>, transform_indices = @transform_4, window_bounds = array<i64: 32, 128>}, {pipeline_mode = #tpu.pipeline_mode<synchronous>, transform_indices = @transform_5, window_bounds = array<i64: 128, 32>}, {pipeline_mode = #tpu.pipeline_mode<synchronous>, transform_indices = @transform_6, window_bounds = array<i64: 32, 48>}, {pipeline_mode = #tpu.pipeline_mode<synchronous>, transform_indices = @transform_7, window_bounds = array<i64: 48, 32>}, {transform_indices = @transform_8, window_bounds = array<i64: 1, 8, 32>}]} {
    %c0_i32 = arith.constant 0 : i32
    %0 = arith.cmpi eq, %arg1, %c0_i32 : i32
    %1 = arith.extui %0 : i1 to i32
    %c0_i32_0 = arith.constant 0 : i32
    %2 = arith.cmpi ne, %1, %c0_i32_0 : i32
    scf.if %2 {
      %cst_40 = arith.constant 0.000000e+00 : f32
      %85 = vector.broadcast %cst_40 : f32 to vector<1x48xf32>
      %c0_41 = arith.constant 0 : index
      %c0_42 = arith.constant 0 : index
      %86 = vector.load %arg11[%c0_41, %c0_42] : memref<1x48xf32, #tpu.memory_space<vmem>>, vector<1x48xf32>
      tpu.vector_store %arg11[%c0_41, %c0_42], %85 {strides = array<i32>} : memref<1x48xf32, #tpu.memory_space<vmem>>, vector<1x48xf32>,
    } else {
    }
    %c0 = arith.constant 0 : index
    %c0_1 = arith.constant 0 : index
    %c0_2 = arith.constant 0 : index
    %3 = vector.load %arg2[%c0, %c0_1, %c0_2] : memref<1x8x32xf32, #tpu.memory_space<vmem>>, vector<1x8x32xf32>
    %4 = vector.shape_cast %3 : vector<1x8x32xf32> to vector<8x32xf32>
    %c0_3 = arith.constant 0 : index
    %c0_4 = arith.constant 0 : index
    %5 = vector.load %arg8[%c0_3, %c0_4] : memref<32x48xf32, #tpu.memory_space<vmem>>, vector<32x48xf32>
    %c0_5 = arith.constant 0 : index
    %c0_6 = arith.constant 0 : index
    %6 = vector.load %arg9[%c0_5, %c0_6] : memref<48x32xf32, #tpu.memory_space<vmem>>, vector<48x32xf32>
    %7 = arith.mulf %4, %4 : vector<8x32xf32>
    %cst = arith.constant dense<0.000000e+00> : vector<8xf32>
    %8 = vector.multi_reduction <add>, %7, %cst [1] : vector<8x32xf32> to vector<8xf32>
    %9 = vector.shape_cast %8 : vector<8xf32> to vector<8x1xf32>
    %cst_7 = arith.constant 1.000000e-24 : f32
    %10 = vector.broadcast %cst_7 : f32 to vector<8x1xf32>
    %11 = arith.maximumf %9, %10 : vector<8x1xf32>
    %12 = math.rsqrt %11 : vector<8x1xf32>
    %13 = vector.broadcast %12 : vector<8x1xf32> to vector<8x32xf32>
    %14 = arith.mulf %4, %13 : vector<8x32xf32>
    %c0_8 = arith.constant 0 : index
    %c0_9 = arith.constant 0 : index
    %15 = vector.load %arg4[%c0_8, %c0_9] : memref<32x96xf32, #tpu.memory_space<vmem>>, vector<32x96xf32>
    %cst_10 = arith.constant dense<0.000000e+00> : vector<8x96xf32>
    %16 = tpu.matmul %14, %15, %cst_10 {dimension_numbers = #tpu.dot_dimension_numbers<[1], [0], [0], [1], [0, 0, 1, 1], [], []>} : vector<8x32xf32>, vector<32x96xf32>, vector<8x96xf32> -> vector<8x96xf32>
    %17 = vector.extract_strided_slice %16 {offsets = [0, 0], sizes = [8, 32], strides = [1, 1]} : vector<8x96xf32> to vector<8x32xf32>
    %18 = vector.extract_strided_slice %16 {offsets = [0, 32], sizes = [8, 32], strides = [1, 1]} : vector<8x96xf32> to vector<8x32xf32>
    %19 = vector.extract_strided_slice %16 {offsets = [0, 64], sizes = [8, 32], strides = [1, 1]} : vector<8x96xf32> to vector<8x32xf32>
    %cst_11 = arith.constant dense<0.000000e+00> : vector<8x48xf32>
    %20 = tpu.matmul %18, %5, %cst_11 {dimension_numbers = #tpu.dot_dimension_numbers<[1], [0], [0], [1], [0, 0, 1, 1], [], []>} : vector<8x32xf32>, vector<32x48xf32>, vector<8x48xf32> -> vector<8x48xf32>
    %21 = vector.extract_strided_slice %20 {offsets = [0, 0], sizes = [8, 24], strides = [1, 1]} : vector<8x48xf32> to vector<8x24xf32>
    %22 = vector.extract_strided_slice %20 {offsets = [0, 24], sizes = [8, 24], strides = [1, 1]} : vector<8x48xf32> to vector<8x24xf32>
    %cst_12 = arith.constant dense<0.000000e+00> : vector<8x48xf32>
    %23 = tpu.matmul %19, %5, %cst_12 {dimension_numbers = #tpu.dot_dimension_numbers<[1], [0], [0], [1], [0, 0, 1, 1], [], []>} : vector<8x32xf32>, vector<32x48xf32>, vector<8x48xf32> -> vector<8x48xf32>
    %24 = vector.extract_strided_slice %23 {offsets = [0, 0], sizes = [8, 24], strides = [1, 1]} : vector<8x48xf32> to vector<8x24xf32>
    %25 = vector.extract_strided_slice %23 {offsets = [0, 24], sizes = [8, 24], strides = [1, 1]} : vector<8x48xf32> to vector<8x24xf32>
    %26 = arith.mulf %21, %24 : vector<8x24xf32>
    %27 = arith.mulf %22, %25 : vector<8x24xf32>
    %28 = arith.subf %26, %27 : vector<8x24xf32>
    %29 = arith.mulf %21, %25 : vector<8x24xf32>
    %30 = arith.mulf %22, %24 : vector<8x24xf32>
    %31 = arith.addf %29, %30 : vector<8x24xf32>
    %32 = tpu.concatenate %28, %31 in 1 : vector<8x24xf32>, vector<8x24xf32> -> vector<8x48xf32>
    %c0_13 = arith.constant 0 : index
    %c0_14 = arith.constant 0 : index
    %33 = vector.load %arg3[%c0_13, %c0_14] : memref<8x8xf32, #tpu.memory_space<vmem>>, vector<8x8xf32>
    %cst_15 = arith.constant dense<0.000000e+00> : vector<8x48xf32>
    %34 = tpu.matmul %33, %32, %cst_15 {dimension_numbers = #tpu.dot_dimension_numbers<[1], [0], [0], [1], [0, 0, 1, 1], [], []>} : vector<8x8xf32>, vector<8x48xf32>, vector<8x48xf32> -> vector<8x48xf32>
    %c0_16 = arith.constant 0 : index
    %c0_17 = arith.constant 0 : index
    %35 = vector.load %arg11[%c0_16, %c0_17] : memref<1x48xf32, #tpu.memory_space<vmem>>, vector<1x48xf32>
    %36 = vector.broadcast %35 : vector<1x48xf32> to vector<8x48xf32>
    %37 = arith.addf %34, %36 : vector<8x48xf32>
    %38 = vector.extract_strided_slice %37 {offsets = [7, 0], sizes = [1, 48], strides = [1, 1]} : vector<8x48xf32> to vector<1x48xf32>
    %c0_18 = arith.constant 0 : index
    %c0_19 = arith.constant 0 : index
    %39 = vector.load %arg11[%c0_18, %c0_19] : memref<1x48xf32, #tpu.memory_space<vmem>>, vector<1x48xf32>
    tpu.vector_store %arg11[%c0_18, %c0_19], %38 {strides = array<i32>} : memref<1x48xf32, #tpu.memory_space<vmem>>, vector<1x48xf32>,
    %40 = vector.extract_strided_slice %37 {offsets = [0, 0], sizes = [8, 24], strides = [1, 1]} : vector<8x48xf32> to vector<8x24xf32>
    %41 = vector.extract_strided_slice %37 {offsets = [0, 24], sizes = [8, 24], strides = [1, 1]} : vector<8x48xf32> to vector<8x24xf32>
    %cst_20 = arith.constant dense<0.000000e+00> : vector<8x48xf32>
    %42 = tpu.matmul %17, %5, %cst_20 {dimension_numbers = #tpu.dot_dimension_numbers<[1], [0], [0], [1], [0, 0, 1, 1], [], []>} : vector<8x32xf32>, vector<32x48xf32>, vector<8x48xf32> -> vector<8x48xf32>
    %43 = vector.extract_strided_slice %42 {offsets = [0, 0], sizes = [8, 24], strides = [1, 1]} : vector<8x48xf32> to vector<8x24xf32>
    %44 = vector.extract_strided_slice %42 {offsets = [0, 24], sizes = [8, 24], strides = [1, 1]} : vector<8x48xf32> to vector<8x24xf32>
    %45 = arith.mulf %43, %40 : vector<8x24xf32>
    %46 = arith.mulf %44, %41 : vector<8x24xf32>
    %47 = arith.addf %45, %46 : vector<8x24xf32>
    %48 = arith.mulf %43, %41 : vector<8x24xf32>
    %49 = arith.mulf %44, %40 : vector<8x24xf32>
    %50 = arith.subf %48, %49 : vector<8x24xf32>
    %51 = tpu.concatenate %47, %50 in 1 : vector<8x24xf32>, vector<8x24xf32> -> vector<8x48xf32>
    %cst_21 = arith.constant dense<0.000000e+00> : vector<8x32xf32>
    %52 = tpu.matmul %51, %6, %cst_21 {dimension_numbers = #tpu.dot_dimension_numbers<[1], [0], [0], [1], [0, 0, 1, 1], [], []>} : vector<8x48xf32>, vector<48x32xf32>, vector<8x32xf32> -> vector<8x32xf32>
    %c0_22 = arith.constant 0 : index
    %c0_23 = arith.constant 0 : index
    %53 = vector.load %arg5[%c0_22, %c0_23] : memref<32x32xf32, #tpu.memory_space<vmem>>, vector<32x32xf32>
    %cst_24 = arith.constant dense<0.000000e+00> : vector<8x32xf32>
    %54 = tpu.matmul %52, %53, %cst_24 {dimension_numbers = #tpu.dot_dimension_numbers<[1], [0], [0], [1], [0, 0, 1, 1], [], []>} : vector<8x32xf32>, vector<32x32xf32>, vector<8x32xf32> -> vector<8x32xf32>
    %55 = arith.addf %4, %54 : vector<8x32xf32>
    %56 = arith.mulf %55, %55 : vector<8x32xf32>
    %cst_25 = arith.constant dense<0.000000e+00> : vector<8xf32>
    %57 = vector.multi_reduction <add>, %56, %cst_25 [1] : vector<8x32xf32> to vector<8xf32>
    %58 = vector.shape_cast %57 : vector<8xf32> to vector<8x1xf32>
    %cst_26 = arith.constant 1.000000e-24 : f32
    %59 = vector.broadcast %cst_26 : f32 to vector<8x1xf32>
    %60 = arith.maximumf %58, %59 : vector<8x1xf32>
    %61 = math.rsqrt %60 : vector<8x1xf32>
    %62 = vector.broadcast %61 : vector<8x1xf32> to vector<8x32xf32>
    %63 = arith.mulf %55, %62 : vector<8x32xf32>
    %c0_27 = arith.constant 0 : index
    %c0_28 = arith.constant 0 : index
    %64 = vector.load %arg6[%c0_27, %c0_28] : memref<32x128xf32, #tpu.memory_space<vmem>>, vector<32x128xf32>
    %cst_29 = arith.constant dense<0.000000e+00> : vector<8x128xf32>
    %65 = tpu.matmul %63, %64, %cst_29 {dimension_numbers = #tpu.dot_dimension_numbers<[1], [0], [0], [1], [0, 0, 1, 1], [], []>} : vector<8x32xf32>, vector<32x128xf32>, vector<8x128xf32> -> vector<8x128xf32>
    %cst_30 = arith.constant 5.000000e-01 : f32
    %66 = vector.broadcast %cst_30 : f32 to vector<8x128xf32>
    %67 = arith.mulf %66, %65 : vector<8x128xf32>
    %68 = arith.mulf %65, %65 : vector<8x128xf32>
    %69 = arith.mulf %68, %65 : vector<8x128xf32>
    %cst_31 = arith.constant 4.471500e-02 : f32
    %70 = vector.broadcast %cst_31 : f32 to vector<8x128xf32>
    %71 = arith.mulf %70, %69 : vector<8x128xf32>
    %72 = arith.addf %65, %71 : vector<8x128xf32>
    %cst_32 = arith.constant 0.797884583 : f32
    %73 = vector.broadcast %cst_32 : f32 to vector<8x128xf32>
    %74 = arith.mulf %73, %72 : vector<8x128xf32>
    %75 = math.tanh %74 : vector<8x128xf32>
    %cst_33 = arith.constant 1.000000e+00 : f32
    %76 = vector.broadcast %cst_33 : f32 to vector<8x128xf32>
    %77 = arith.addf %76, %75 : vector<8x128xf32>
    %78 = arith.mulf %67, %77 : vector<8x128xf32>
    %c0_34 = arith.constant 0 : index
    %c0_35 = arith.constant 0 : index
    %79 = vector.load %arg7[%c0_34, %c0_35] : memref<128x32xf32, #tpu.memory_space<vmem>>, vector<128x32xf32>
    %cst_36 = arith.constant dense<0.000000e+00> : vector<8x32xf32>
    %80 = tpu.matmul %78, %79, %cst_36 {dimension_numbers = #tpu.dot_dimension_numbers<[1], [0], [0], [1], [0, 0, 1, 1], [], []>} : vector<8x128xf32>, vector<128x32xf32>, vector<8x32xf32> -> vector<8x32xf32>
    %81 = arith.addf %55, %80 : vector<8x32xf32>
    %c0_37 = arith.constant 0 : index
    %c0_38 = arith.constant 0 : index
    %c0_39 = arith.constant 0 : index
    %82 = vector.load %arg10[%c0_37, %c0_38, %c0_39] : memref<1x8x32xf32, #tpu.memory_space<vmem>>, vector<1x8x32xf32>
    %83 = vector.shape_cast %82 : vector<1x8x32xf32> to vector<8x32xf32>
    %84 = vector.shape_cast %81 : vector<8x32xf32> to vector<1x8x32xf32>
    tpu.vector_store %arg10[%c0_37, %c0_38, %c0_39], %84 {strides = array<i32>} : memref<1x8x32xf32, #tpu.memory_space<vmem>>, vector<1x8x32xf32>,
    return
  }
  func.func @transform_0(%arg0: i32, %arg1: i32) -> (i32, i32, i32) {
    %c0_i32 = arith.constant 0 : i32
    %c0_i32_0 = arith.constant 0 : i32
    return %arg0, %arg1, %c0_i32 : i32, i32, i32
  }
  func.func @transform_1(%arg0: i32, %arg1: i32) -> (i32, i32) {
    %c0_i32 = arith.constant 0 : i32
    %c0_i32_0 = arith.constant 0 : i32
    %c0_i32_1 = arith.constant 0 : i32
    return %c0_i32, %c0_i32_0 : i32, i32
  }
  func.func @transform_2(%arg0: i32, %arg1: i32) -> (i32, i32) {
    %c0_i32 = arith.constant 0 : i32
    %c0_i32_0 = arith.constant 0 : i32
    %c0_i32_1 = arith.constant 0 : i32
    return %c0_i32, %c0_i32_0 : i32, i32
  }
  func.func @transform_3(%arg0: i32, %arg1: i32) -> (i32, i32) {
    %c0_i32 = arith.constant 0 : i32
    %c0_i32_0 = arith.constant 0 : i32
    %c0_i32_1 = arith.constant 0 : i32
    return %c0_i32, %c0_i32_0 : i32, i32
  }
  func.func @transform_4(%arg0: i32, %arg1: i32) -> (i32, i32) {
    %c0_i32 = arith.constant 0 : i32
    %c0_i32_0 = arith.constant 0 : i32
    %c0_i32_1 = arith.constant 0 : i32
    return %c0_i32, %c0_i32_0 : i32, i32
  }
  func.func @transform_5(%arg0: i32, %arg1: i32) -> (i32, i32) {
    %c0_i32 = arith.constant 0 : i32
    %c0_i32_0 = arith.constant 0 : i32
    %c0_i32_1 = arith.constant 0 : i32
    return %c0_i32, %c0_i32_0 : i32, i32
  }
  func.func @transform_6(%arg0: i32, %arg1: i32) -> (i32, i32) {
    %c0_i32 = arith.constant 0 : i32
    %c0_i32_0 = arith.constant 0 : i32
    %c0_i32_1 = arith.constant 0 : i32
    return %c0_i32, %c0_i32_0 : i32, i32
  }
  func.func @transform_7(%arg0: i32, %arg1: i32) -> (i32, i32) {
    %c0_i32 = arith.constant 0 : i32
    %c0_i32_0 = arith.constant 0 : i32
    %c0_i32_1 = arith.constant 0 : i32
    return %c0_i32, %c0_i32_0 : i32, i32
  }
  func.func @transform_8(%arg0: i32, %arg1: i32) -> (i32, i32, i32) {
    %c0_i32 = arith.constant 0 : i32
    %c0_i32_0 = arith.constant 0 : i32
    return %arg0, %arg1, %c0_i32 : i32, i32, i32
  }
}

</mosaic_0001>

<bundles_post_ra>
// kernel: tpu_custom_call.1
= control target key start
LH: loop header
LB: loop body
LE: loop exit
PB: predicated region body
PF: predicated region fallthrough
CT: control target
= control target key end

     0   :  { %13 = vsyncpa [#allocation4], 0  ;;  %s1233_s0 = inlined_call_operand.vmem [shape: f32[2,8,32], index: 0, kind: input, shape index: {}]   ;;  %s1234_s1 = inlined_call_operand.vmem [shape: f32[8,8], index: 1, kind: input, shape index: {}]   ;;  %s1235_s2 = inlined_call_operand.vmem [shape: f32[32,96], index: 2, kind: input, shape index: {}]   ;;  %s1236_s3 = inlined_call_operand.vmem [shape: f32[32,32], index: 3, kind: input, shape index: {}]   ;;  %s1237_s4 = inlined_call_operand.vmem [shape: f32[32,128], index: 4, kind: input, shape index: {}]   ;;  %s1238_s5 = inlined_call_operand.vmem [shape: f32[128,32], index: 5, kind: input, shape index: {}]   ;;  %s1239_s6 = inlined_call_operand.vmem [shape: f32[32,48], index: 6, kind: input, shape index: {}]   ;;  %s1240_s7 = inlined_call_operand.vmem [shape: f32[48,32], index: 7, kind: input, shape index: {}]   ;;  %s1241_s8 = inlined_call_operand.hbm [shape: f32[2,8,32], index: 8, kind: output, shape index: {}]  }
   0x1   :  { %15 = vsyncpa [#allocation4 + $0x1], 0  ;;  %s986_s27 = smov 0   ;;  %s988_s28 = smov 0  }
   0x2   :  { %s990_s29 = smov 0   ;;  %s992_s30 = smov 0  }
   0x3   :  { %s994_s9 = smov 0   ;;  %s996_s10 = smov 0  }
   0x4 LB: > { %s770_s11 = sadd.s32 4294967295, %s934_s10   ;;  %s771_s12 = sadd.s32 4294967294, %s934_s10   ;;  %s934_s10 = sphi %s996_s10, %s21_s10   ;;  %s930_s9 = sphi %s994_s9, %s1248_s9   ;;  %s926_s30 = sphi %s992_s30, %s1247_s30   ;;  %s922_s29 = sphi %s990_s29, %s1246_s29   ;;  %s918_s28 = sphi %s988_s28, %s1245_s28   ;;  %s914_s27 = sphi %s986_s27, %s1244_s27  }
   0x5   : > { %s33_s13 = sadd.s32 1, %s930_s9  ;;  %s217_s14 = sadd.s32 1, %s922_s29 }
   0x6   : > { %p35_p0 = scmp.ge.s32.totalorder %s33_s13, 2  ;;  %p227_p1 = scmp.ne.s32.totalorder %s922_s29, %s918_s28 }
   0x7   : > { %p228_p2 = scmp.eq.s32.totalorder %s770_s11, 1  ;;  %p233_p3 = scmp.ne.s32.totalorder %s918_s28, %s914_s27 }
   0x8   : > { %s1250_s13 = smov (%p35_p0, %s33_s13), 0  ;;  %p234_p5 = scmp.eq.s32.totalorder %s771_s12, 1 }
   0x9   : > { %p1026_p4 = por %p228_p2, %p227_p1  ;;  %s212_s16 = ssub.s32 %s930_s9, %s1250_s13 }
   0xa   : > { %p774_p6 = scmp.ge.s32.totalorder %s934_s10, 1  ;;  %p215_p7 = scmp.eq.s32.totalorder %s212_s16, 0 }
   0xb   : > { %p1033_p8 = por %p234_p5, %p233_p3  ;;  %p283_p9 = scmp.lt.s32.totalorder %s934_s10, 3 }
   0xc   : > { %s1039_s18 = scalar_select %p215_p7, %s922_s29, %s217_s14  }
   0xd   : > { %p284_p10 = pnand %p774_p6, %p283_p9 }
   0xe   : > { %p319_p11 = scmp.lt.s32.totalorder (!%p284_p10), %s926_s30, 1  ;;  %s936_s12 = smov (!%p284_p10), 96  }
   0xf   : > { %287 = sbr.rel (%p284_p10) target bundleno = 1987 (0x7c3), region = 52  ;;  %s937_s14 = smov (!%p284_p10), 64  }
  0x10   : > { %s938_s16 = smov (!%p284_p10), 104   ;;  %s786_s25 = sshll.u32 (!%p284_p10), %s926_s30, 3 }
  0x14   : > { %s320_s19 = scalar_select %p319_p11, %s926_s30, 1  ;;  %vm344_vm0 = vcmask 261120   ;;  %v363_v3 = vld [vmem:[%s1235_s2 + $0x18] sm:$0xff]  ;;  %v362_v4 = vld [vmem:[%s1235_s2 + $0x10] sm:$0xff]  ;;  %v361_v5 = vld [vmem:[%s1235_s2 + $0x8] sm:$0xff]  ;;  %vm330_vm4 = vcmask 385024  }
  0x15   : > { %379 = vmatpush.msra.mxu0 %v363_v3  ;;  %v360_v6 = vld [vmem:[%s1235_s2] sm:$0xff]  ;;  %v336_v17 = vld [vmem:[%s1239_s6 + $0x18] sm:$0xff]  ;;  %v335_v18 = vld [vmem:[%s1239_s6 + $0x10] sm:$0xff]  ;;  %v940_v33 = vmov 0.0   ;;  %vm460_vm5 = vcmask 195584   ;;  %vm467_vm6 = vcmask 64512  }
  0x16   : > { %s776_s20 = sshll.u32 %s320_s19, 3  ;;  %404 = vmatpush.msra.mxu1 %v336_v17  ;;  %428 = vmatpush.msra.mxu2 %v336_v17  ;;  %v334_v19 = vld [vmem:[%s1239_s6 + $0x8] sm:$0xff]  ;;  %v333_v20 = vld [vmem:[%s1239_s6] sm:$0xff]  ;;  %s939_s19 = smov 24   ;;  %331 = vst.msk [vmem:[#allocation2] sm:$0x1] %vm330_vm4, %v940_v33 }
  0x17   : > { %s325_s23 = scalar_lea.vmem %s1233_s0, %s776_s20  ;;  %380 = vmatpush.msra.mxu0 %v362_v4  ;;  %v462_v37 = vld [vmem:[%s1234_s1] sm:$0xff]  ;;  %vm491_vm7 = vcmask 392199   ;;  %v342_v46 = vld [vmem:[%s1240_s7 + $0x28] sm:$0xff]  ;;  %v340_v48 = vld [vmem:[%s1240_s7 + $0x18] sm:$0xff]  ;;  %vm540_vm8 = vcmask 392192  }
  0x18   : > { %v1046_v0 = vld [vmem:[%s325_s23] sm:$0xff]  ;;  %405 = vmatpush.msra.mxu1 %v335_v18  ;;  %429 = vmatpush.msra.mxu2 %v335_v18  ;;  %v339_v49 = vld [vmem:[%s1240_s7 + $0x10] sm:$0xff]  ;;  %v338_v50 = vld [vmem:[%s1240_s7 + $0x8] sm:$0xff]  ;;  %s316_s23 = sand.u32 1, %s918_s28  }
  0x19   : > { %v343_v1 = vmul.f32 %v1046_v0, %v1046_v0  ;;  %381 = vmatpush.msra.mxu0 %v361_v5  ;;  %v341_v47 = vld [vmem:[%s1240_s7 + $0x20] sm:$0xff]  ;;  %v567_v56 = vld [vmem:[%s1236_s3 + $0x18] sm:$0xff]  ;;  %v566_v57 = vld [vmem:[%s1236_s3 + $0x10] sm:$0xff]  ;;  %s775_s24 = sshll.u32 %s316_s23, 3  ;;  %s683_s20 = scalar_lea.sflag [#allocation4], %s316_s23 }
  0x1a   : > { %406 = vmatpush.msra.mxu1 %v334_v19  ;;  %430 = vmatpush.msra.mxu2 %v334_v19  ;;  %v337_v55 = vld [vmem:[%s1240_s7] sm:$0xff]  ;;  %v565_v58 = vld [vmem:[%s1236_s3 + $0x8] sm:$0xff] }
  0x1b   : > { %v345_v2 = vsel %vm344_vm0, %v343_v1, 0.0  ;;  %382 = vmatpush.msra.mxu0 %v360_v6  ;;  %v564_v63 = vld [vmem:[%s1236_s3] sm:$0xff]  ;;  %v611_v6 = vld [vmem:[%s1237_s4 + $0x18] sm:$0xff]  ;;  %v645_v33 = vld [vmem:[%s1238_s5 + $0x8] sm:$0xff] }
  0x1c   : > { %346 = vadd.xlane.f32.xlu0 %v345_v2  ;;  %407 = vmatpush.msra.mxu1 %v333_v20 }
  0x1d   : > { %431 = vmatpush.msra.mxu2 %v333_v20  ;;  %v849_v39 = vld [vmem:[#allocation2] ss:$0 sm:$0xff]  ;;  %554 = vmatpush.msrb.mxu0 %v342_v46 }
  0x1e   : > { %507 = vmatpush.msrb.mxu1 %v336_v17 }
  0x1f   : > { %555 = vmatpush.msrb.mxu0 %v341_v47 }
  0x20   : > { %508 = vmatpush.msrb.mxu1 %v335_v18 }
  0x21   : > { %556 = vmatpush.msrb.mxu0 %v340_v48 }
  0x22   : > { %509 = vmatpush.msrb.mxu1 %v334_v19 }
  0x23   : > { %557 = vmatpush.msrb.mxu0 %v339_v49 }
  0x24   : > { %510 = vmatpush.msrb.mxu1 %v333_v20 }
  0x25   : > { %558 = vmatpush.msrb.mxu0 %v338_v50 }
  0x27   : > { %559 = vmatpush.msrb.mxu0 %v337_v55 }
  0x8f   : > { %v347_v7 = vpop.xlane.xlu0 %346 }
  0x90   : > { %v348_v8 = vmax.f32 %v347_v7, 1e-24  ;;  %v610_v7 = vld [vmem:[%s1237_s4 + $0x10] sm:$0xff] }
  0x92   : > { %850 = vrsqrt.f32 %v348_v8  ;;  %vm355_vm2 = vweird.f32 %v348_v8 }
  0x98   : > { %v851_v9 = vpop.eup %850 }
  0x99   : > { %v350_v10 = vmul.f32 %v851_v9, %v348_v8  ;;  %vm356_vm1 = vweird.f32 %v851_v9  ;;  %v608_v8 = vld [vmem:[%s1237_s4] sm:$0xff] }
  0x9a   : > { %vm357_vm3 = vmor %vm355_vm2, %vm356_vm1 }
  0x9b   : > { %v351_v11 = vmul.f32 %v851_v9, %v350_v10  ;;  %v658_v10 = vld [vmem:[%s1238_s5 + $0x70] sm:$0xff] }
  0x9d   : > { %v352_v12 = vmul.f32 0.5, %v351_v11  ;;  %v657_v11 = vld [vmem:[%s1238_s5 + $0x68] sm:$0xff] }
  0x9f   : > { %v353_v13 = vsub.f32 1.5, %v352_v12  ;;  %v656_v12 = vld [vmem:[%s1238_s5 + $0x60] sm:$0xff] }
  0xa1   : > { %v354_v14 = vmul.f32 %v851_v9, %v353_v13  ;;  %v655_v13 = vld [vmem:[%s1238_s5 + $0x58] sm:$0xff] }
  0xa3   : > { %v358_v15 = vsel %vm357_vm3, %v851_v9, %v354_v14  ;;  %v659_v9 = vld [vmem:[%s1238_s5 + $0x78] sm:$0xff] }
  0xa4   : > { %v359_v16 = vmul.f32 %v358_v15, %v1046_v0  ;;  %660 = vmatpush.msra.mxu3 %v659_v9 }
  0xa6   : > { %777 = vmatmul.msk.f32.vlgmr.msra.gmra.mxu0 %vm344_vm0, %v359_v16  ;;  %661 = vmatpush.msra.mxu3 %v658_v10 }
  0xa8   : > { %662 = vmatpush.msra.mxu3 %v657_v11 }
  0xaa   : > { %663 = vmatpush.msra.mxu3 %v656_v12 }
  0xac   : > { %664 = vmatpush.msra.mxu3 %v655_v13 }
 0x123   : > { %v384_v21 = vpop.f32.mrf.mxu0 }
 0x124   : > { %388 = vrot.lane.b32.xlu1 %v384_v21, %s936_s12  ;;  %412 = vrot.lane.b32.xlu0 %v384_v21, %s937_s14  ;;  %s694_s12 = scalar_lea.hbm %s1241_s8, %s786_s25 }
 0x196   : > { %v389_v22 = vpop.permute.xlu1 %388  ;;  %v413_v23 = vpop.permute.xlu0 %412 }
 0x197   : > { %778 = vmatmul.msk.f32.vlgmr.msra.gmra.mxu1 %vm344_vm0, %v389_v22  ;;  %779 = vmatmul.msk.f32.vlgmr.msra.gmra.mxu2 %vm344_vm0, %v413_v23 }
 0x198   : > { %583 = vmatpush.msra.mxu1 %v567_v56 }
 0x19a   : > { %584 = vmatpush.msra.mxu1 %v566_v57 }
 0x19c   : > { %585 = vmatpush.msra.mxu1 %v565_v58 }
 0x19e   : > { %586 = vmatpush.msra.mxu1 %v564_v63 }
 0x19f   : > { %781 = vmatmul.msk.f32.vlgmr.msrb.gmra.mxu1 %vm344_vm0, %v384_v21 }
 0x214   : > { %v409_v25 = vpop.f32.mrf.mxu1 }
 0x21a   : > { %v433_v24 = vpop.f32.mrf.mxu2 }
 0x21b   : > { %443 = vrot.lane.b32.xlu2 %v433_v24, %s938_s16  ;;  %447 = vrot.lane.b32.xlu1 %v433_v24, %s939_s19  ;;  %v436_v26 = vmul.f32 %v433_v24, %v409_v25  ;;  %v654_v24 = vld [vmem:[%s1238_s5 + $0x50] sm:$0xff] }
 0x21c   : > { %v512_v42 = vpop.f32.mrf.mxu1  ;;  %665 = vmatpush.msra.mxu3 %v654_v24 }
 0x223   : > { %438 = vrot.lane.b32.xlu1 %v436_v26, %s938_s16 }
 0x275   : > { %v444_v29 = vpop.permute.xlu2 %443 }
 0x276   : > { %v446_v30 = vmul.f32 %v444_v29, %v409_v25  ;;  %v649_v29 = vld [vmem:[%s1238_s5 + $0x28] sm:$0xff] }
 0x28d   : > { %v448_v27 = vpop.permute.xlu1 %447 }
 0x28e   : > { %v450_v28 = vmul.f32 %v448_v27, %v409_v25  ;;  %v653_v25 = vld [vmem:[%s1238_s5 + $0x48] sm:$0xff]  ;;  %v651_v27 = vld [vmem:[%s1238_s5 + $0x38] sm:$0xff] }
 0x28f   : > { %666 = vmatpush.msra.mxu3 %v653_v25 }
 0x290   : > { %452 = vrot.lane.b32.xlu2 %v450_v28, %s938_s16  ;;  %v650_v28 = vld [vmem:[%s1238_s5 + $0x30] sm:$0xff] }
 0x295   : > { %v439_v34 = vpop.permute.xlu1 %438 }
 0x296   : > { %v441_v35 = vsub.f32 %v436_v26, %v439_v34  ;;  %v652_v26 = vld [vmem:[%s1238_s5 + $0x40] sm:$0xff] }
 0x297   : > { %667 = vmatpush.msra.mxu3 %v652_v26  ;;  %v644_v34 = vld [vmem:[%s1238_s5] sm:$0xff] }
 0x299   : > { %668 = vmatpush.msra.mxu3 %v651_v27 }
 0x29b   : > { %669 = vmatpush.msra.mxu3 %v650_v28 }
 0x29d   : > { %670 = vmatpush.msra.mxu3 %v649_v29 }
 0x2ea   : > { %v453_v31 = vpop.permute.xlu2 %452 }
 0x2eb   : > { %v455_v32 = vadd.f32 %v453_v31, %v446_v30  ;;  %v648_v30 = vld [vmem:[%s1238_s5 + $0x20] sm:$0xff]  ;;  %v647_v31 = vld [vmem:[%s1238_s5 + $0x18] sm:$0xff] }
 0x2ec   : > { %671 = vmatpush.msra.mxu3 %v648_v30 }
 0x2ed   : > { %457 = vrot.lane.b32.xlu2 %v455_v32, %s939_s19  ;;  %v646_v32 = vld [vmem:[%s1238_s5 + $0x10] sm:$0xff] }
 0x2ee   : > { %672 = vmatpush.msra.mxu3 %v647_v31 }
 0x2f0   : > { %673 = vmatpush.msra.mxu3 %v646_v32 }
 0x2f2   : > { %674 = vmatpush.msra.mxu3 %v645_v33 }
 0x2f4   : > { %675 = vmatpush.msra.mxu3 %v644_v34 }
 0x347   : > { %v458_v36 = vpop.permute.xlu2 %457 }
 0x348   : > { %v461_v38 = vsel %vm460_vm5, %v441_v35, %v458_v36 }
 0x349   : > { %486 = vmatpush.msrb.mxu2 %v461_v38 }
 0x34a   : > { %780 = vmatmul.msk.f32.vlgmr.msrb.gmra.mxu2 %vm467_vm6, %v462_v37 }
 0x34b   : > { %627 = vmatpush.msra.mxu2 %v611_v6 }
 0x34d   : > { %628 = vmatpush.msra.mxu2 %v610_v7 }
 0x3cd   : > { %v488_v40 = vpop.f32.mrf.mxu2 }
 0x3ce   : > { %v489_v41 = vadd.f32 %v849_v39, %v488_v40 }
 0x3d0   : > { %492 = vst.msk [vmem:[#allocation2 - $0x7] sm:$0x80] %vm491_vm7, %v489_v41  ;;  %522 = vrot.lane.b32.xlu2 %v489_v41, %s938_s16  ;;  %526 = vrot.lane.b32.xlu1 %v489_v41, %s939_s19  ;;  %v515_v43 = vmul.f32 %v512_v42, %v489_v41 }
 0x3d8   : > { %517 = vrot.lane.b32.xlu1 %v515_v43, %s938_s16 }
 0x42a   : > { %v523_v51 = vpop.permute.xlu2 %522 }
 0x42b   : > { %v525_v52 = vmul.f32 %v523_v51, %v512_v42 }
 0x442   : > { %v527_v44 = vpop.permute.xlu1 %526 }
 0x443   : > { %v529_v45 = vmul.f32 %v527_v44, %v512_v42 }
 0x445   : > { %531 = vrot.lane.b32.xlu0 %v529_v45, %s938_s16  ;;  %s698_s16 = sshll.u32 %s694_s12, 4  ;;  %s699_s16 = int_to_ptr.hbm [resolvable:$true] %s698_s16 }
 0x446   : > { %s870_s21 = sshra.s32 %s699_s16, 4  ;;  %s871_s21 = int_to_ptr.hbm [resolvable:$true] %s870_s21 }
 0x447   : > { %s872_s22 = scalar_lea.hbm %s871_s21, 8  ;;  %p877_p1 = scmp.lt.s32.totalorder %s871_s21, %s1241_s8 }
 0x448   : > { %p873_p12 = scmp.ne.s32.totalorder %s871_s21, %s872_s22 }
 0x44a   : > { %v518_v59 = vpop.permute.xlu1 %517  ;;  %p874_p13 = pnand %p873_p12, %p1026_p4 }
 0x44b   : > { %v520_v60 = vadd.f32 %v518_v59, %v515_v43 }
 0x44c   : > { %p875_p0 = pneg %p874_p13 }
 0x4b7   : > { %v532_v53 = vpop.permute.xlu0 %531 }
 0x4b8   : > { %v534_v54 = vsub.f32 %v525_v52, %v532_v53 }
 0x4ba   : > { %536 = vrot.lane.b32.xlu2 %v534_v54, %s939_s19  ;;  %s318_s19 = scalar_lea.vmem [#allocation3], %s775_s24  ;;  %s876_s24 = scalar_lea.hbm %s1241_s8, 16 }
 0x4bb   : > { %s696_s14 = sshll.u32 %s318_s19, 4  ;;  %p878_p2 = scmp.lt.s32.totalorder %s876_s24, %s872_s22  ;;  %s697_s14 = int_to_ptr.vmem [resolvable:$true] %s696_s14 }
 0x4bd   : > { %p879_p3 = por %p878_p2, %p877_p1 }
 0x4bf   : > { %p880_p5 = pnand %p879_p3, %p875_p0 }
 0x514   : > { %v537_v61 = vpop.permute.xlu2 %536 }
 0x515   : > { %v539_v62 = vsel %vm460_vm5, %v520_v60, %v537_v61 }
 0x516   : > { %782 = vmatmul.msk.f32.vlgmr.msrb.gmra.mxu0 %vm540_vm8, %v539_v62 }
 0x593   : > { %v561_v1 = vpop.f32.mrf.mxu0 }
 0x594   : > { %783 = vmatmul.msk.f32.vlgmr.msra.gmra.mxu1 %vm344_vm0, %v561_v1 }
 0x611   : > { %v588_v2 = vpop.f32.mrf.mxu1 }
 0x612   : > { %v1127_v3 = vadd.f32 %v588_v2, %v1046_v0  ;;  %v609_v0 = vld [vmem:[%s1237_s4 + $0x8] sm:$0xff] }
 0x613   : > { %629 = vmatpush.msra.mxu2 %v609_v0 }
 0x614   : > { %v592_v4 = vmul.f32 %v1127_v3, %v1127_v3 }
 0x615   : > { %630 = vmatpush.msra.mxu2 %v608_v8 }
 0x616   : > { %v593_v5 = vsel %vm344_vm0, %v592_v4, 0.0 }
 0x617   : > { %594 = vadd.xlane.f32.xlu0 %v593_v5 }
 0x68a   : > { %v595_v14 = vpop.xlane.xlu0 %594 }
 0x68b   : > { %v596_v15 = vmax.f32 %v595_v14, 1e-24 }
 0x68d   : > { %852 = vrsqrt.f32 %v596_v15  ;;  %vm603_vm10 = vweird.f32 %v596_v15 }
 0x693   : > { %v853_v16 = vpop.eup %852 }
 0x694   : > { %v598_v17 = vmul.f32 %v853_v16, %v596_v15  ;;  %vm604_vm9 = vweird.f32 %v853_v16 }
 0x695   : > { %vm605_vm11 = vmor %vm603_vm10, %vm604_vm9 }
 0x696   : > { %v599_v18 = vmul.f32 %v853_v16, %v598_v17 }
 0x698   : > { %v600_v19 = vmul.f32 0.5, %v599_v18 }
 0x69a   : > { %v601_v20 = vsub.f32 1.5, %v600_v19 }
 0x69c   : > { %v602_v21 = vmul.f32 %v853_v16, %v601_v20 }
 0x69e   : > { %v606_v22 = vsel %vm605_vm11, %v853_v16, %v602_v21 }
 0x69f   : > { %v607_v23 = vmul.f32 %v606_v22, %v1127_v3 }
 0x6a1   : > { %784 = vmatmul.msk.f32.vlgmr.msra.gmra.mxu2 %vm344_vm0, %v607_v23 }
 0x724   : > { %v632_v35 = vpop.f32.mrf.mxu2 }
 0x725   : > { %v636_v36 = vmul.f32 %v632_v35, %v632_v35  ;;  %v635_v42 = vmul.f32 0.5, %v632_v35 }
 0x727   : > { %v637_v37 = vmul.f32 %v636_v36, %v632_v35 }
 0x729   : > { %v638_v38 = vmul.f32 0.044715, %v637_v37 }
 0x72b   : > { %v639_v39 = vadd.f32 %v638_v38, %v632_v35 }
 0x72d   : > { %v640_v40 = vmul.f32 0.7978846, %v639_v39 }
 0x72f   : > { %854 = vtanh.f32 %v640_v40 }
 0x735   : > { %v855_v41 = vpop.eup %854 }
 0x736   : > { %v642_v43 = vadd.f32 1.0, %v855_v41 }
 0x738   : > { %v643_v44 = vmul.f32 %v642_v43, %v635_v42 }
 0x73a   : > { %676 = vmatmul.f32.vlgmr.msra.gmra.mxu3 %v643_v44 }
 0x7bd   : > { %v677_v45 = vpop.f32.mrf.mxu3 }
 0x7be   : > { %v680_v46 = vadd.f32 %v677_v45, %v1127_v3 }
 0x7c0   : > { %681 = vst.msk [vmem:[%s318_s19] sm:$0xff] %vm344_vm0, %v680_v46 }
 0x7c1   : > { %883 = shalt.err (!%p880_p5)
}
 0x7c2   : > { %789 = dma.vmem_to_hbm [thread:$0]  (%p1026_p4), %s697_s14, 128, %s699_s16, %s683_s20  }
 0x7c3 PF: > { %p795_p6 = scmp.ge.s32.totalorder %s934_s10, 2  ;;  %s710_s23 = sand.u32 1, %s914_s27  }
 0x7c4   : > { %s711_s12 = scalar_lea.sflag [#allocation4], %s710_s23 }
 0x7c5   : > { %p792_p7 = pnand %p795_p6, %p1033_p8 }
 0x7c7   : > { %p793_p9 = pneg %p792_p7 }
 0x7c9   : > { %909 = dma.done.wait (%p793_p9), %s711_s12, 128  }
 0x7ca   : > { %911 = vsyncadd (%p793_p9), %s711_s12, 4294967168  ;;  %s21_s10 = sadd.s32 1, %s934_s10   ;;  %s1244_s27 = smov %s918_s28 }
 0x7cb   : > { %p18_p10 = scmp.ge.s32.totalorder %s21_s10, 4   ;;  %s1245_s28 = smov %s922_s29 }
 0x7cc   : > { %s1246_s29 = smov %s1039_s18  ;;  %s1247_s30 = smov %s930_s9 }
 0x7cd   : > { %s1248_s9 = smov %s1250_s13  ;;  %20 = sbr.rel (!%p18_p10) target bundleno = 4 (0x4), region = 91 }
 0x7d2   :  { %717 = vsyncpa [#allocation4], 1 }
 0x7d3   :  { %719 = vsyncpa [#allocation4 + $0x1], 1 }

</bundles_post_ra>
